<compile_context>
chip_gen: v7x
topology: tpu7x:2x2x1
jax: 0.10.0
libtpu: 0.0.40
codegen_flags: <defaults>
</compile_context>

<pallas_src>
import functools

import jax
import jax.numpy as jnp
from jax.experimental import pallas as pl
from jax.experimental.pallas import tpu as pltpu

FEAT_CH = 576                 # mobilenet_v3_small final feature channels
HIDDEN = 256
PATCH = 4                     # stand-in backbone patch size / stride
K_RAW = 3 * PATCH * PATCH     # 48 -- fed to the kernel unpadded (full last dim)
MAX_TILE_HW = 1024            # bigger tiles: ~0.5 MiB bf16 block, safe on v5e-v7x


def _pick_hw_tile(hw, max_tile=MAX_TILE_HW):
    """Return (tile, padded_hw): tile is a multiple of 8, padded_hw % tile == 0."""
    if hw <= max_tile:
        t = ((hw + 7) // 8) * 8
        return t, t
    for t in range(max_tile, 7, -8):           # largest mult-of-8 divisor <= max
        if hw % t == 0:
            return t, hw
    # no clean divisor: bounded tile + zero-padded rows (zeros add 0 to the sum)
    padded = ((hw + max_tile - 1) // max_tile) * max_tile
    return max_tile, padded


# ---------------------------------------------------------------------------
# Fused kernel: backbone matmul + global average pool + detector head
# ---------------------------------------------------------------------------
def _fused_kernel(x_ref, wb_ref, bb_ref, w1_ref, b1_ref, w2_ref, b2_ref,
                  out_ref, acc_ref, *, inv_hw):
    # x_ref : (TILE_HW, 48)  bf16   (batch dim squeezed by BlockSpec)
    # wb_ref: (48, 576) bf16, bb_ref: (1, 576) f32
    # w1_ref: (576, 256) bf16, b1_ref: (1, 256) f32
    # w2_ref: (256, Dp) bf16,  b2_ref: (1, Dp)  f32
    # out_ref: (1, Dp) f32   (resident across the HW grid axis, written last tile)
    # acc_ref: (8, 576) f32 VMEM scratch (running partial sums, sublane-aligned)
    t = pl.program_id(1)

    @pl.when(t == 0)
    def _():
        acc_ref[...] = jnp.zeros_like(acc_ref)

    feats = jnp.dot(x_ref[...], wb_ref[...],
                    preferred_element_type=jnp.float32)          # (TILE_HW, 576)
    tile, c = feats.shape
    # Sublane-aligned partial accumulation: pure element-wise vreg adds (VPU),
    # no per-tile cross-sublane (XLU) reduce.
    acc_ref[...] += feats.reshape(tile // 8, 8, c).sum(axis=0)

    @pl.when(t == pl.num_programs(1) - 1)
    def _():
        # collapse 8 partial rows -> mean over HW, add backbone bias
        pooled = acc_ref[...].sum(axis=0, keepdims=True) * inv_hw + bb_ref[...]
        # detector head, fused: Linear -> ReLU -> Dropout(id @ eval) -> Linear
        h = jnp.dot(pooled.astype(jnp.bfloat16), w1_ref[...],
                    preferred_element_type=jnp.float32)
        h = jnp.maximum(h + b1_ref[...], 0.0)
        out = jnp.dot(h.astype(jnp.bfloat16), w2_ref[...],
                      preferred_element_type=jnp.float32) + b2_ref[...]
        out_ref[...] = out.astype(out_ref.dtype)                 # (1, Dp)


def fused_forward(patches, wb, bb, w1, b1, w2p, b2p, *, tile_hw, hw_real):
    """patches:(B, HWpad, 48) bf16 -> head output (B, Dp) f32."""
    B, hw_pad, K = patches.shape
    C = wb.shape[1]
    H1 = w1.shape[1]
    Dp = w2p.shape[1]
    assert hw_pad % tile_hw == 0
    kernel = functools.partial(_fused_kernel, inv_hw=1.0 / hw_real)
    out = pl.pallas_call(
        kernel,
        out_shape=jax.ShapeDtypeStruct((B, 1, Dp), jnp.float32),
        grid=(B, hw_pad // tile_hw),
        in_specs=[
            pl.BlockSpec((None, tile_hw, K), lambda b, t: (b, t, 0)),
            pl.BlockSpec((K, C), lambda b, t: (0, 0)),    # constant: fetched once
            pl.BlockSpec((1, C), lambda b, t: (0, 0)),
            pl.BlockSpec((C, H1), lambda b, t: (0, 0)),
            pl.BlockSpec((1, H1), lambda b, t: (0, 0)),
            pl.BlockSpec((H1, Dp), lambda b, t: (0, 0)),
            pl.BlockSpec((1, Dp), lambda b, t: (0, 0)),
        ],
        out_specs=pl.BlockSpec((None, 1, Dp), lambda b, t: (b, 0, 0)),
        scratch_shapes=[pltpu.VMEM((8, C), jnp.float32)],
        compiler_params=pltpu.CompilerParams(
            dimension_semantics=("parallel", "arbitrary")),
    )(patches, wb, bb, w1, b1, w2p, b2p)
    return out.reshape(B, Dp)


# ---------------------------------------------------------------------------
# Params + forward wrapper (glue in plain JAX, hot path in one Pallas kernel)
# ---------------------------------------------------------------------------
def init_params(key, num_classes):
    k0, k1, k2, k3, k4 = jax.random.split(key, 5)
    d_out = 4 + num_classes
    return {
        # stand-in backbone: 4x4/stride-4 patch conv, 3 -> 576 channels
        "wb": jax.random.normal(k0, (K_RAW, FEAT_CH), jnp.float32) * 0.05,
        "bb": jnp.zeros((1, FEAT_CH), jnp.float32),
        # detector head: Linear(576,256), Linear(256, 4+num_classes)
        "w1": jax.random.normal(k1, (FEAT_CH, HIDDEN), jnp.float32) * 0.02,
        "b1": jax.random.normal(k2, (1, HIDDEN), jnp.float32) * 0.01,
        "w2": jax.random.normal(k3, (HIDDEN, d_out), jnp.float32) * 0.02,
        "b2": jax.random.normal(k4, (1, d_out), jnp.float32) * 0.01,
    }


def lightweight_detector_forward(params, x):
    """x: (B, 3, H, W) float32, NCHW (PyTorch convention) -> (bbox, classes)."""
    B, C_in, H, W = x.shape
    Hp, Wp = H // PATCH, W // PATCH
    HW = Hp * Wp

    # im2col (XLA glue): (B,3,H,W) -> (B, HW, 48) bf16.  No K padding in HBM.
    patches = x.reshape(B, C_in, Hp, PATCH, Wp, PATCH)
    patches = patches.transpose(0, 2, 4, 1, 3, 5)
    patches = patches.reshape(B, HW, C_in * PATCH * PATCH).astype(jnp.bfloat16)

    tile_hw, hw_pad = _pick_hw_tile(HW)
    if hw_pad != HW:
        patches = jnp.pad(patches, ((0, 0), (0, hw_pad - HW), (0, 0)))

    # bf16 weights (f32 MXU accumulation); biases stay f32.
    wb = params["wb"].astype(jnp.bfloat16)
    w1 = params["w1"].astype(jnp.bfloat16)
    d_out = params["w2"].shape[1]
    d_pad = ((d_out + 127) // 128) * 128          # lane-dense head output
    w2p = jnp.pad(params["w2"], ((0, 0), (0, d_pad - d_out))).astype(jnp.bfloat16)
    b2p = jnp.pad(params["b2"], ((0, 0), (0, d_pad - d_out)))

    out = fused_forward(patches, wb, params["bb"], w1, params["b1"], w2p, b2p,
                        tile_hw=tile_hw, hw_real=HW)             # (B, d_pad)
    out = out[:, :d_out]
    bbox = out[:, :4]
    classes = out[:, 4:]
    return bbox, classes


def _reference_forward(params, x):
    """Pure-JAX f32 reference (same stand-in backbone) for a tolerance check."""
    B, C_in, H, W = x.shape
    Hp, Wp = H // PATCH, W // PATCH
    patches = x.reshape(B, C_in, Hp, PATCH, Wp, PATCH).transpose(0, 2, 4, 1, 3, 5)
    patches = patches.reshape(B, Hp * Wp, C_in * PATCH * PATCH)
    feats = patches @ params["wb"] + params["bb"]
    pooled = feats.mean(axis=1)
    h = jnp.maximum(pooled @ params["w1"] + params["b1"], 0.0)
    out = h @ params["w2"] + params["b2"]
    return out[:, :4], out[:, 4:]


# ---------------------------------------------------------------------------
if __name__ == "__main__":
    num_classes = 6
    key = jax.random.PRNGKey(0)
    k_param, k_x = jax.random.split(key)

    params = init_params(k_param, num_classes)
    x = jax.random.normal(k_x, (2, 3, 32, 32), jnp.float32)   # NCHW images

    bbox, classes = jax.jit(lightweight_detector_forward)(params, x)
    jax.block_until_ready((bbox, classes))

    assert bbox.shape == (2, 4), bbox.shape
    assert classes.shape == (2, num_classes), classes.shape

    # tolerance check vs pure-JAX f32 reference (bf16 drift expected)
    ref_bbox, ref_classes = _reference_forward(params, x)
    assert jnp.allclose(bbox, ref_bbox, rtol=0.2, atol=1e-2), "bbox mismatch"
    assert jnp.allclose(classes, ref_classes, rtol=0.2, atol=1e-2), "class mismatch"

    print("KERNEL_OK")
</pallas_src>

<mosaic_0001>
module attributes {stable_mosaic.version = 11 : i64} {
  func.func @_fused_kernel(%arg0: i32, %arg1: i32, %arg2: memref<1x64x48xbf16, #tpu.memory_space<vmem>>, %arg3: memref<48x576xbf16, #tpu.memory_space<vmem>>, %arg4: memref<1x576xf32, #tpu.memory_space<vmem>>, %arg5: memref<576x256xbf16, #tpu.memory_space<vmem>>, %arg6: memref<1x256xf32, #tpu.memory_space<vmem>>, %arg7: memref<256x128xbf16, #tpu.memory_space<vmem>>, %arg8: memref<1x128xf32, #tpu.memory_space<vmem>>, %arg9: memref<1x1x128xf32, #tpu.memory_space<vmem>>, %arg10: memref<8x576xf32, #tpu.memory_space<vmem>>) attributes {dimension_semantics = [#tpu.dimension_semantics<parallel>, #tpu.dimension_semantics<arbitrary>], iteration_bounds = array<i64: 2, 1>, scalar_prefetch = 0 : i64, scratch_operands = 1 : i64, tpu.core_type = #tpu.core_type<tc>, window_params = [{transform_indices = @transform_0, window_bounds = array<i64: 1, 64, 48>}, {pipeline_mode = #tpu.pipeline_mode<synchronous>, transform_indices = @transform_1, window_bounds = array<i64: 48, 576>}, {pipeline_mode = #tpu.pipeline_mode<synchronous>, transform_indices = @transform_2, window_bounds = array<i64: 1, 576>}, {pipeline_mode = #tpu.pipeline_mode<synchronous>, transform_indices = @transform_3, window_bounds = array<i64: 576, 256>}, {pipeline_mode = #tpu.pipeline_mode<synchronous>, transform_indices = @transform_4, window_bounds = array<i64: 1, 256>}, {pipeline_mode = #tpu.pipeline_mode<synchronous>, transform_indices = @transform_5, window_bounds = array<i64: 256, 128>}, {pipeline_mode = #tpu.pipeline_mode<synchronous>, transform_indices = @transform_6, window_bounds = array<i64: 1, 128>}, {transform_indices = @transform_7, window_bounds = array<i64: 1, 1, 128>}]} {
    %c0_i32 = arith.constant 0 : i32
    %0 = arith.cmpi eq, %arg1, %c0_i32 : i32
    %1 = arith.extui %0 : i1 to i32
    %c0_i32_0 = arith.constant 0 : i32
    %2 = arith.cmpi ne, %1, %c0_i32_0 : i32
    scf.if %2 {
      %cst_12 = arith.constant 0.000000e+00 : f32
      %15 = vector.broadcast %cst_12 : f32 to vector<8x576xf32>
      %c0_13 = arith.constant 0 : index
      %c0_14 = arith.constant 0 : index
      %16 = vector.load %arg10[%c0_13, %c0_14] : memref<8x576xf32, #tpu.memory_space<vmem>>, vector<8x576xf32>
      tpu.vector_store %arg10[%c0_13, %c0_14], %15 {strides = array<i32>} : memref<8x576xf32, #tpu.memory_space<vmem>>, vector<8x576xf32>,
    } else {
    }
    %c0 = arith.constant 0 : index
    %c0_1 = arith.constant 0 : index
    %c0_2 = arith.constant 0 : index
    %3 = vector.load %arg2[%c0, %c0_1, %c0_2] : memref<1x64x48xbf16, #tpu.memory_space<vmem>>, vector<1x64x48xbf16>
    %4 = vector.shape_cast %3 : vector<1x64x48xbf16> to vector<64x48xbf16>
    %c0_3 = arith.constant 0 : index
    %c0_4 = arith.constant 0 : index
    %5 = vector.load %arg3[%c0_3, %c0_4] : memref<48x576xbf16, #tpu.memory_space<vmem>>, vector<48x576xbf16>
    %cst = arith.constant dense<0.000000e+00> : vector<64x576xf32>
    %6 = tpu.matmul %4, %5, %cst {dimension_numbers = #tpu.dot_dimension_numbers<[1], [0], [0], [1], [0, 0, 1, 1], [], []>} : vector<64x48xbf16>, vector<48x576xbf16>, vector<64x576xf32> -> vector<64x576xf32>
    %c0_5 = arith.constant 0 : index
    %c0_6 = arith.constant 0 : index
    %7 = vector.load %arg10[%c0_5, %c0_6] : memref<8x576xf32, #tpu.memory_space<vmem>>, vector<8x576xf32>
    %8 = vector.shape_cast %6 : vector<64x576xf32> to vector<8x8x576xf32>
    %cst_7 = arith.constant dense<0.000000e+00> : vector<8x576xf32>
    %9 = vector.multi_reduction <add>, %8, %cst_7 [0] : vector<8x8x576xf32> to vector<8x576xf32>
    %10 = arith.addf %7, %9 : vector<8x576xf32>
    %c0_8 = arith.constant 0 : index
    %c0_9 = arith.constant 0 : index
    %11 = vector.load %arg10[%c0_8, %c0_9] : memref<8x576xf32, #tpu.memory_space<vmem>>, vector<8x576xf32>
    tpu.vector_store %arg10[%c0_8, %c0_9], %10 {strides = array<i32>} : memref<8x576xf32, #tpu.memory_space<vmem>>, vector<8x576xf32>,
    %c0_i32_10 = arith.constant 0 : i32
    %12 = arith.cmpi eq, %arg1, %c0_i32_10 : i32
    %13 = arith.extui %12 : i1 to i32
    %c0_i32_11 = arith.constant 0 : i32
    %14 = arith.cmpi ne, %13, %c0_i32_11 : i32
    scf.if %14 {
      %c0_12 = arith.constant 0 : index
      %c0_13 = arith.constant 0 : index
      %15 = vector.load %arg10[%c0_12, %c0_13] : memref<8x576xf32, #tpu.memory_space<vmem>>, vector<8x576xf32>
      %cst_14 = arith.constant dense<0.000000e+00> : vector<576xf32>
      %16 = vector.multi_reduction <add>, %15, %cst_14 [0] : vector<8x576xf32> to vector<576xf32>
      %17 = vector.shape_cast %16 : vector<576xf32> to vector<1x576xf32>
      %cst_15 = arith.constant 1.562500e-02 : f32
      %18 = vector.broadcast %cst_15 : f32 to vector<1x576xf32>
      %19 = arith.mulf %17, %18 : vector<1x576xf32>
      %c0_16 = arith.constant 0 : index
      %c0_17 = arith.constant 0 : index
      %20 = vector.load %arg4[%c0_16, %c0_17] : memref<1x576xf32, #tpu.memory_space<vmem>>, vector<1x576xf32>
      %21 = arith.addf %19, %20 : vector<1x576xf32>
      %22 = arith.truncf %21 : vector<1x576xf32> to vector<1x576xbf16>
      %c0_18 = arith.constant 0 : index
      %c0_19 = arith.constant 0 : index
      %23 = vector.load %arg5[%c0_18, %c0_19] : memref<576x256xbf16, #tpu.memory_space<vmem>>, vector<576x256xbf16>
      %cst_20 = arith.constant dense<0.000000e+00> : vector<1x256xf32>
      %24 = tpu.matmul %22, %23, %cst_20 {dimension_numbers = #tpu.dot_dimension_numbers<[1], [0], [0], [1], [0, 0, 1, 1], [], []>} : vector<1x576xbf16>, vector<576x256xbf16>, vector<1x256xf32> -> vector<1x256xf32>
      %c0_21 = arith.constant 0 : index
      %c0_22 = arith.constant 0 : index
      %25 = vector.load %arg6[%c0_21, %c0_22] : memref<1x256xf32, #tpu.memory_space<vmem>>, vector<1x256xf32>
      %26 = arith.addf %24, %25 : vector<1x256xf32>
      %cst_23 = arith.constant 0.000000e+00 : f32
      %27 = vector.broadcast %cst_23 : f32 to vector<1x256xf32>
      %28 = arith.maximumf %26, %27 : vector<1x256xf32>
      %29 = arith.truncf %28 : vector<1x256xf32> to vector<1x256xbf16>
      %c0_24 = arith.constant 0 : index
      %c0_25 = arith.constant 0 : index
      %30 = vector.load %arg7[%c0_24, %c0_25] : memref<256x128xbf16, #tpu.memory_space<vmem>>, vector<256x128xbf16>
      %cst_26 = arith.constant dense<0.000000e+00> : vector<1x128xf32>
      %31 = tpu.matmul %29, %30, %cst_26 {dimension_numbers = #tpu.dot_dimension_numbers<[1], [0], [0], [1], [0, 0, 1, 1], [], []>} : vector<1x256xbf16>, vector<256x128xbf16>, vector<1x128xf32> -> vector<1x128xf32>
      %c0_27 = arith.constant 0 : index
      %c0_28 = arith.constant 0 : index
      %32 = vector.load %arg8[%c0_27, %c0_28] : memref<1x128xf32, #tpu.memory_space<vmem>>, vector<1x128xf32>
      %33 = arith.addf %31, %32 : vector<1x128xf32>
      %c0_29 = arith.constant 0 : index
      %c0_30 = arith.constant 0 : index
      %c0_31 = arith.constant 0 : index
      %34 = vector.load %arg9[%c0_29, %c0_30, %c0_31] : memref<1x1x128xf32, #tpu.memory_space<vmem>>, vector<1x1x128xf32>
      %35 = vector.shape_cast %34 : vector<1x1x128xf32> to vector<1x128xf32>
      %36 = vector.shape_cast %33 : vector<1x128xf32> to vector<1x1x128xf32>
      tpu.vector_store %arg9[%c0_29, %c0_30, %c0_31], %36 {strides = array<i32>} : memref<1x1x128xf32, #tpu.memory_space<vmem>>, vector<1x1x128xf32>,
    } else {
    }
    return
  }
  func.func @transform_0(%arg0: i32, %arg1: i32) -> (i32, i32, i32) {
    %c0_i32 = arith.constant 0 : i32
    %c0_i32_0 = arith.constant 0 : i32
    return %arg0, %arg1, %c0_i32 : i32, i32, i32
  }
  func.func @transform_1(%arg0: i32, %arg1: i32) -> (i32, i32) {
    %c0_i32 = arith.constant 0 : i32
    %c0_i32_0 = arith.constant 0 : i32
    %c0_i32_1 = arith.constant 0 : i32
    return %c0_i32, %c0_i32_0 : i32, i32
  }
  func.func @transform_2(%arg0: i32, %arg1: i32) -> (i32, i32) {
    %c0_i32 = arith.constant 0 : i32
    %c0_i32_0 = arith.constant 0 : i32
    %c0_i32_1 = arith.constant 0 : i32
    return %c0_i32, %c0_i32_0 : i32, i32
  }
  func.func @transform_3(%arg0: i32, %arg1: i32) -> (i32, i32) {
    %c0_i32 = arith.constant 0 : i32
    %c0_i32_0 = arith.constant 0 : i32
    %c0_i32_1 = arith.constant 0 : i32
    return %c0_i32, %c0_i32_0 : i32, i32
  }
  func.func @transform_4(%arg0: i32, %arg1: i32) -> (i32, i32) {
    %c0_i32 = arith.constant 0 : i32
    %c0_i32_0 = arith.constant 0 : i32
    %c0_i32_1 = arith.constant 0 : i32
    return %c0_i32, %c0_i32_0 : i32, i32
  }
  func.func @transform_5(%arg0: i32, %arg1: i32) -> (i32, i32) {
    %c0_i32 = arith.constant 0 : i32
    %c0_i32_0 = arith.constant 0 : i32
    %c0_i32_1 = arith.constant 0 : i32
    return %c0_i32, %c0_i32_0 : i32, i32
  }
  func.func @transform_6(%arg0: i32, %arg1: i32) -> (i32, i32) {
    %c0_i32 = arith.constant 0 : i32
    %c0_i32_0 = arith.constant 0 : i32
    %c0_i32_1 = arith.constant 0 : i32
    return %c0_i32, %c0_i32_0 : i32, i32
  }
  func.func @transform_7(%arg0: i32, %arg1: i32) -> (i32, i32, i32) {
    %c0_i32 = arith.constant 0 : i32
    %c0_i32_0 = arith.constant 0 : i32
    %c0_i32_1 = arith.constant 0 : i32
    return %arg0, %c0_i32, %c0_i32_0 : i32, i32, i32
  }
}

</mosaic_0001>

<bundles_post_ra>
// kernel: lightweight_detector_forward.1
= control target key start
LH: loop header
LB: loop body
LE: loop exit
PB: predicated region body
PF: predicated region fallthrough
CT: control target
= control target key end

     0   :  { %s2029_s24 = smov 0   ;;  %s2031_s25 = smov 0   ;;  %s2445_s0 = inlined_call_operand.vmem [shape: bf16[2,64,48], index: 0, kind: input, shape index: {}]   ;;  %s2446_s1 = inlined_call_operand.vmem [shape: bf16[48,576], index: 1, kind: input, shape index: {}]   ;;  %s2447_s2 = inlined_call_operand.vmem [shape: f32[1,576], index: 2, kind: input, shape index: {}]   ;;  %s2448_s3 = inlined_call_operand.vmem [shape: bf16[576,256], index: 3, kind: input, shape index: {}]   ;;  %s2449_s4 = inlined_call_operand.vmem [shape: f32[1,256], index: 4, kind: input, shape index: {}]   ;;  %s2450_s5 = inlined_call_operand.vmem [shape: bf16[256,128], index: 5, kind: input, shape index: {}]   ;;  %s2451_s6 = inlined_call_operand.vmem [shape: f32[1,128], index: 6, kind: input, shape index: {}]   ;;  %s2452_s7 = inlined_call_operand.vmem [shape: f32[2,1,128], index: 7, kind: output, shape index: {}]  }
   0x1   :  { %s2033_s26 = smov 0  }
   0x2 LB: > { %s29_s27 = sadd.s32 1, %s1981_s25  ;;  %p1611_p0 = scmp.ge.s32.totalorder %s1985_s26, 1  ;;  %s1985_s26 = sphi %s2033_s26, %s17_s26   ;;  %s1981_s25 = sphi %s2031_s25, %s2454_s25   ;;  %s1977_s24 = sphi %s2029_s24, %s2453_s24  }
   0x3   : > { %p31_p1 = scmp.ge.s32.totalorder %s29_s27, 2  ;;  %p256_p2 = scmp.lt.s32.totalorder %s1985_s26, 3 }
   0x5   : > { %s2456_s27 = smov (%p31_p1, %s29_s27), 0  ;;  %p257_p3 = pnand %p1611_p0, %p256_p2 }
   0x6   : > { %v1814_v0 = vld [vmem:[%s2446_s1 + $0x4] ss:$20 sps:$4 sm:$0xff] (!%p257_p3)   ;;  %p291_p4 = scmp.lt.s32.totalorder (!%p257_p3), %s1977_s24, 1  ;;  %v1816_v1 = vld [vmem:[%s2446_s1] ss:$20 sps:$4 sm:$0xff] (!%p257_p3)   ;;  %v1987_v2 = vmov (!%p257_p3), 0  }
   0x7   : > { %260 = sbr.rel (%p257_p3) target bundleno = 765 (0x2fd), region = 48  ;;  %483 = vmatprep.mubr.bf16.mxu1 (!%p257_p3), %v1987_v2  ;;  %451 = vmatprep.subr.bf16.mxu1 (!%p257_p3), %v1814_v0  ;;  %v1817_v3 = vld [vmem:[%s2446_s1 + $0x2c] ss:$20 sps:$4 sm:$0xff] (!%p257_p3)   ;;  %v1819_v4 = vld [vmem:[%s2446_s1 + $0x28] ss:$20 sps:$4 sm:$0xff] (!%p257_p3)   ;;  %vm438_vm0 = vcmask (!%p257_p3), 392192  }
   0x8   : > { %452 = vmatpush1.bf16.msra.mxu1 (!%p257_p3), %v1816_v1  ;;  %v1820_v5 = vld [vmem:[%s2446_s1 + $0x54] ss:$20 sps:$4 sm:$0xff] (!%p257_p3)   ;;  %v1822_v7 = vld [vmem:[%s2446_s1 + $0x50] ss:$20 sps:$4 sm:$0xff] (!%p257_p3)   ;;  %v1826_v8 = vld [vmem:[%s2446_s1 + $0xc] ss:$20 sps:$4 sm:$0xff] (!%p257_p3)  }
   0x9   : > { %453 = vmatprep.subr.bf16.mxu1 (!%p257_p3), %v1817_v3  ;;  %v1824_v9 = vld [vmem:[%s2446_s1 + $0x8] ss:$20 sps:$4 sm:$0xff] (!%p257_p3)   ;;  %v1836_v11 = vld [vmem:[%s2446_s1 + $0x10] ss:$20 sps:$4 sm:$0xff] (!%p257_p3)   ;;  %v1837_v12 = vld [vmem:[%s2446_s1 + $0x38] ss:$20 sps:$4 sm:$0xff] (!%p257_p3)  }
   0xa   : > { %v1830_v10 = vld [vmem:[%s2446_s1 + $0x34] ss:$20 sps:$4 sm:$0xff] (!%p257_p3)   ;;  %1766 = vmatprep.subr.bf16.mxu0 (!%p257_p3), %v1836_v11  ;;  %v1828_v13 = vld [vmem:[%s2446_s1 + $0x30] ss:$20 sps:$4 sm:$0xff] (!%p257_p3)   ;;  %v1832_v16 = vld [vmem:[%s2446_s1 + $0x58] ss:$20 sps:$4 sm:$0xff] (!%p257_p3)  }
   0xb   : > { %v1834_v15 = vld [vmem:[%s2446_s1 + $0x5c] ss:$20 sps:$4 sm:$0xff] (!%p257_p3)   ;;  %1767 = vmatpush3.bf16.msra.mxu0 (!%p257_p3), %v1836_v11  ;;  %v1838_v17 = vld [vmem:[%s2446_s1 + $0x60] ss:$20 sps:$4 sm:$0xff] (!%p257_p3)   ;;  %v1841_v18 = vld [vmem:[%s2448_s3 + $0x4] ss:$8 sps:$4 sm:$0xff] (!%p257_p3)  }
   0xc   : > { %454 = vmatpush1.bf16.msra.mxu1 (!%p257_p3), %v1819_v4  ;;  %1768 = vmatprep.subr.bf16.mxu0 (!%p257_p3), %v1837_v12  ;;  %v1839_v19 = vld [vmem:[%s2448_s3] ss:$8 sps:$4 sm:$0xff] (!%p257_p3)   ;;  %v1844_v20 = vld [vmem:[%s2448_s3 + $0x14] ss:$8 sps:$4 sm:$0xff] (!%p257_p3)   ;;  %v1842_v22 = vld [vmem:[%s2448_s3 + $0x10] ss:$8 sps:$4 sm:$0xff] (!%p257_p3)  }
   0xd   : > { %455 = vmatprep.subr.bf16.mxu1 (!%p257_p3), %v1820_v5  ;;  %v1847_v24 = vld [vmem:[%s2448_s3 + $0x24] ss:$8 sps:$4 sm:$0xff] (!%p257_p3)   ;;  %v1845_v25 = vld [vmem:[%s2448_s3 + $0x20] ss:$8 sps:$4 sm:$0xff] (!%p257_p3)   ;;  %v1850_v26 = vld [vmem:[%s2448_s3 + $0x34] ss:$8 sps:$4 sm:$0xff] (!%p257_p3)  }
   0xe   : > { %s2458_s24 = smov (!%p291_p4, %s1977_s24), 1  ;;  %v1848_v27 = vld [vmem:[%s2448_s3 + $0x30] ss:$8 sps:$4 sm:$0xff]   ;;  %v1853_v28 = vld [vmem:[%s2448_s3 + $0x44] ss:$8 sps:$4 sm:$0xff]   ;;  %vm312_vm1 = vcmask 523264  }
   0xf   : > { %s1736_s15 = sshll.u32 %s2458_s24, 5  ;;  %1769 = vmatpush3.bf16.msra.mxu0 %v1837_v12  ;;  %v1851_v29 = vld [vmem:[%s2448_s3 + $0x40] ss:$8 sps:$4 sm:$0xff]   ;;  %v1856_v30 = vld [vmem:[%s2448_s3 + $0x54] ss:$8 sps:$4 sm:$0xff]   ;;  %v1988_v61 = vmov 0.0   ;;  %s302_s14 = scalar_lea.vmem %s2452_s7, %s2458_s24 }
  0x10   : > { %s2069_s18 = scalar_lea.vmem %s2445_s0, %s1736_s15  ;;  %456 = vmatpush1.bf16.msra.mxu1 %v1822_v7  ;;  %1770 = vmatprep.subr.bf16.mxu0 %v1838_v17  ;;  %v1854_v31 = vld [vmem:[%s2448_s3 + $0x50] ss:$8 sps:$4 sm:$0xff]   ;;  %v1859_v32 = vld [vmem:[%s2448_s3 + $0x64] ss:$8 sps:$4 sm:$0xff]   ;;  %v1857_v33 = vld [vmem:[%s2448_s3 + $0x60] ss:$8 sps:$4 sm:$0xff]  }
  0x11   : > { %v1823_v6 = vld [vmem:[%s2069_s18] sm:$0xff]   ;;  %524 = vmatprep.subr.bf16.mxu1 %v1826_v8  ;;  %v1827_v14 = vld [vmem:[%s2069_s18 + $0x8] sm:$0xff]   ;;  %v1831_v21 = vld [vmem:[%s2069_s18 + $0x10] sm:$0xff]   ;;  %313 = vst.msk [vmem:[#allocation2 + $0x20] sm:$0xff] %vm312_vm1, %v1988_v61 }
  0x12   : > { %1772 = vmatprep.mubr.msk.bf16.mxu0 %vm438_vm0, %v1823_v6  ;;  %v1835_v23 = vld [vmem:[%s2069_s18 + $0x18] sm:$0xff]   ;;  %v1865_v36 = vld [vmem:[%s2448_s3 + $0x104] ss:$8 sps:$4 sm:$0xff]   ;;  %v1863_v37 = vld [vmem:[%s2448_s3 + $0x100] ss:$8 sps:$4 sm:$0xff]  }
  0x13   : > { %1633 = vmatmul.mubr.msk.bf16.vlgmr.msra.gmra.mrb[0].mxu1 %vm438_vm0, %v1823_v6  ;;  %1771 = vmatpush3.bf16.msra.mxu0 %v1838_v17  ;;  %v1862_v34 = vld [vmem:[%s2448_s3 + $0x74] ss:$8 sps:$4 sm:$0xff]   ;;  %v1860_v35 = vld [vmem:[%s2448_s3 + $0x70] ss:$8 sps:$4 sm:$0xff]   ;;  %v1868_v38 = vld [vmem:[%s2448_s3 + $0x84] ss:$8 sps:$4 sm:$0xff]  }
  0x14   : > { %525 = vmatpush1.bf16.msra.mxu1 %v1824_v9  ;;  %493 = vmatprep.mubr.bf16.mxu1 %v1987_v2  ;;  %v1866_v39 = vld [vmem:[%s2448_s3 + $0x80] ss:$8 sps:$4 sm:$0xff]   ;;  %v1871_v40 = vld [vmem:[%s2448_s3 + $0x114] ss:$8 sps:$4 sm:$0xff]   ;;  %v1869_v41 = vld [vmem:[%s2448_s3 + $0x110] ss:$8 sps:$4 sm:$0xff]  }
  0x15   : > { %526 = vmatprep.subr.bf16.mxu1 %v1830_v10  ;;  %1249 = vmatprep.subr.bf16.mxu0 %v1841_v18  ;;  %v1874_v42 = vld [vmem:[%s2448_s3 + $0x94] ss:$8 sps:$4 sm:$0xff]   ;;  %v1872_v43 = vld [vmem:[%s2448_s3 + $0x90] ss:$8 sps:$4 sm:$0xff]   ;;  %v1877_v44 = vld [vmem:[%s2448_s3 + $0x124] ss:$8 sps:$4 sm:$0xff]  }
  0x16   : > { %1773 = vmatmul.mubr.msk.bf16.vlgmr.msra.gmra.mrb[0].mxu0 %vm438_vm0, %v1827_v14  ;;  %v1875_v45 = vld [vmem:[%s2448_s3 + $0x120] ss:$8 sps:$4 sm:$0xff]   ;;  %v1880_v46 = vld [vmem:[%s2448_s3 + $0xa4] ss:$8 sps:$4 sm:$0xff]   ;;  %v1883_v48 = vld [vmem:[%s2448_s3 + $0x134] ss:$8 sps:$4 sm:$0xff]  }
  0x17   : > { %1776 = vmatprep.mubr.msk.bf16.mxu0 %vm438_vm0, %v1831_v21  ;;  %1250 = vmatpush1.bf16.msra.mxu0 %v1839_v19  ;;  %v1878_v47 = vld [vmem:[%s2448_s3 + $0xa0] ss:$8 sps:$4 sm:$0xff]   ;;  %v1881_v49 = vld [vmem:[%s2448_s3 + $0x130] ss:$8 sps:$4 sm:$0xff]   ;;  %v1886_v50 = vld [vmem:[%s2448_s3 + $0xb4] ss:$8 sps:$4 sm:$0xff]  }
  0x18   : > { %527 = vmatpush1.bf16.msra.mxu1 %v1828_v13  ;;  %1251 = vmatprep.subr.bf16.mxu0 %v1844_v20  ;;  %v1884_v51 = vld [vmem:[%s2448_s3 + $0xb0] ss:$8 sps:$4 sm:$0xff]   ;;  %v1889_v52 = vld [vmem:[%s2448_s3 + $0x144] ss:$8 sps:$4 sm:$0xff]   ;;  %v1887_v53 = vld [vmem:[%s2448_s3 + $0x140] ss:$8 sps:$4 sm:$0xff]  }
  0x19   : > { %528 = vmatprep.subr.bf16.mxu1 %v1834_v15  ;;  %v1892_v54 = vld [vmem:[%s2448_s3 + $0xc4] ss:$8 sps:$4 sm:$0xff]   ;;  %v1890_v55 = vld [vmem:[%s2448_s3 + $0xc0] ss:$8 sps:$4 sm:$0xff]   ;;  %v1895_v56 = vld [vmem:[%s2448_s3 + $0x154] ss:$8 sps:$4 sm:$0xff]  }
  0x1a   : > { %v1893_v57 = vld [vmem:[%s2448_s3 + $0x150] ss:$8 sps:$4 sm:$0xff]   ;;  %v1898_v58 = vld [vmem:[%s2448_s3 + $0xd4] ss:$8 sps:$4 sm:$0xff]   ;;  %v1901_v60 = vld [vmem:[%s2448_s3 + $0x164] ss:$8 sps:$4 sm:$0xff]  }
  0x1b   : > { %1634 = vmatmul.mubr.msk.bf16.gmra.mrb[4].mxu1 %vm438_vm0, %v1827_v14  ;;  %1252 = vmatpush1.bf16.msra.mxu0 %v1842_v22  ;;  %v1896_v59 = vld [vmem:[%s2448_s3 + $0xd0] ss:$8 sps:$4 sm:$0xff]   ;;  %v1899_v62 = vld [vmem:[%s2448_s3 + $0x160] ss:$8 sps:$4 sm:$0xff]   ;;  %v1904_v63 = vld [vmem:[%s2448_s3 + $0xe4] ss:$8 sps:$4 sm:$0xff]  }
  0x1c   : > { %503 = vmatprep.mubr.bf16.mxu1 %v1987_v2  ;;  %529 = vmatpush1.bf16.msra.mxu1 %v1832_v16  ;;  %v1902_v0 = vld [vmem:[%s2448_s3 + $0xe0] ss:$8 sps:$4 sm:$0xff]   ;;  %v1907_v1 = vld [vmem:[%s2448_s3 + $0x174] ss:$8 sps:$4 sm:$0xff]   ;;  %v1905_v3 = vld [vmem:[%s2448_s3 + $0x170] ss:$8 sps:$4 sm:$0xff]  }
  0x1d   : > { %1253 = vmatprep.subr.bf16.mxu0 %v1847_v24  ;;  %1290 = vmatprep.subr.bf16.mxu1 %v1865_v36  ;;  %v1910_v4 = vld [vmem:[%s2448_s3 + $0xf4] ss:$8 sps:$4 sm:$0xff]   ;;  %v1908_v5 = vld [vmem:[%s2448_s3 + $0xf0] ss:$8 sps:$4 sm:$0xff]   ;;  %v1911_v7 = vld [vmem:[%s2448_s3 + $0x180] ss:$8 sps:$4 sm:$0xff]  }
  0x1e   : > { %1777 = vmatmul.mubr.msk.bf16.gmra.mrb[4].mxu0 %vm438_vm0, %v1835_v23  ;;  %v1916_v8 = vld [vmem:[%s2448_s3 + $0x194] ss:$8 sps:$4 sm:$0xff]   ;;  %v1914_v9 = vld [vmem:[%s2448_s3 + $0x190] ss:$8 sps:$4 sm:$0xff]   ;;  %v1919_v10 = vld [vmem:[%s2448_s3 + $0x1a4] ss:$8 sps:$4 sm:$0xff]  }
  0x1f   : > { %1254 = vmatpush1.bf16.msra.mxu0 %v1845_v25  ;;  %v1917_v11 = vld [vmem:[%s2448_s3 + $0x1a0] ss:$8 sps:$4 sm:$0xff]   ;;  %v1922_v12 = vld [vmem:[%s2448_s3 + $0x1b4] ss:$8 sps:$4 sm:$0xff]   ;;  %v1920_v13 = vld [vmem:[%s2448_s3 + $0x1b0] ss:$8 sps:$4 sm:$0xff]  }
  0x20   : > { %1255 = vmatprep.subr.bf16.mxu0 %v1850_v26  ;;  %v1925_v15 = vld [vmem:[%s2448_s3 + $0x1c4] ss:$8 sps:$4 sm:$0xff]   ;;  %v1928_v16 = vld [vmem:[%s2448_s3 + $0x1d4] ss:$8 sps:$4 sm:$0xff]   ;;  %v1926_v17 = vld [vmem:[%s2448_s3 + $0x1d0] ss:$8 sps:$4 sm:$0xff]  }
  0x21   : > { %v1931_v18 = vld [vmem:[%s2448_s3 + $0x1e4] ss:$8 sps:$4 sm:$0xff]   ;;  %v1929_v19 = vld [vmem:[%s2448_s3 + $0x1e0] ss:$8 sps:$4 sm:$0xff]   ;;  %v1934_v20 = vld [vmem:[%s2448_s3 + $0x1f4] ss:$8 sps:$4 sm:$0xff]  }
  0x22   : > { %v1937_v22 = vld [vmem:[%s2448_s3 + $0x204] ss:$8 sps:$4 sm:$0xff]  }
  0x23   : > { %1635 = vmatmul.mubr.msk.bf16.gmra.mrb[8].mxu1 %vm438_vm0, %v1831_v21  ;;  %1256 = vmatpush1.bf16.msra.mxu0 %v1848_v27 }
  0x24   : > { %513 = vmatprep.mubr.bf16.mxu1 %v1987_v2  ;;  %1257 = vmatprep.subr.bf16.mxu0 %v1853_v28 }
  0x27   : > { %1258 = vmatpush1.bf16.msra.mxu0 %v1851_v29 }
  0x28   : > { %1259 = vmatprep.subr.bf16.mxu0 %v1856_v30 }
  0x2b   : > { %1636 = vmatmul.mubr.msk.bf16.gmra.mrb[12].mxu1 %vm438_vm0, %v1835_v23  ;;  %1260 = vmatpush1.bf16.msra.mxu0 %v1854_v31 }
  0x2c   : > { %556 = vmatprep.mubr.bf16.mxu1 %v1987_v2  ;;  %1261 = vmatprep.subr.bf16.mxu0 %v1859_v32 }
  0x2f   : > { %1262 = vmatpush1.bf16.msra.mxu0 %v1857_v33 }
  0x30   : > { %1263 = vmatprep.subr.bf16.mxu0 %v1862_v34 }
  0x33   : > { %1637 = vmatmul.mubr.msk.bf16.vlgmr.msra.gmra.mrb[16].mxu1 %vm438_vm0, %v1823_v6  ;;  %1264 = vmatpush1.bf16.msra.mxu0 %v1860_v35  ;;  %v1913_v6 = vld [vmem:[%s2448_s3 + $0x184] ss:$8 sps:$4 sm:$0xff]  }
  0x34   : > { %566 = vmatprep.mubr.bf16.mxu1 %v1987_v2  ;;  %1265 = vmatprep.subr.bf16.mxu0 %v1868_v38 }
  0x35   : > { %1291 = vmatpush1.bf16.msra.mxu1 %v1863_v37 }
  0x36   : > { %1292 = vmatprep.subr.bf16.mxu1 %v1871_v40 }
  0x37   : > { %1266 = vmatpush1.bf16.msra.mxu0 %v1866_v39 }
  0x38   : > { %1267 = vmatprep.subr.bf16.mxu0 %v1874_v42 }
  0x39   : > { %1293 = vmatpush1.bf16.msra.mxu1 %v1869_v41 }
  0x3a   : > { %1294 = vmatprep.subr.bf16.mxu1 %v1877_v44 }
  0x3b   : > { %1638 = vmatmul.mubr.msk.bf16.gmra.mrb[20].mxu1 %vm438_vm0, %v1827_v14  ;;  %1268 = vmatpush1.bf16.msra.mxu0 %v1872_v43  ;;  %v1923_v14 = vld [vmem:[%s2448_s3 + $0x1c0] ss:$8 sps:$4 sm:$0xff]  }
  0x3c   : > { %576 = vmatprep.mubr.bf16.mxu1 %v1987_v2  ;;  %1269 = vmatprep.subr.bf16.mxu0 %v1880_v46 }
  0x3d   : > { %1295 = vmatpush1.bf16.msra.mxu1 %v1875_v45 }
  0x3e   : > { %1296 = vmatprep.subr.bf16.mxu1 %v1883_v48 }
  0x3f   : > { %1270 = vmatpush1.bf16.msra.mxu0 %v1878_v47 }
  0x40   : > { %1271 = vmatprep.subr.bf16.mxu0 %v1886_v50 }
  0x41   : > { %1297 = vmatpush1.bf16.msra.mxu1 %v1881_v49 }
  0x42   : > { %1298 = vmatprep.subr.bf16.mxu1 %v1889_v52 }
  0x43   : > { %1639 = vmatmul.mubr.msk.bf16.gmra.mrb[24].mxu1 %vm438_vm0, %v1831_v21  ;;  %1272 = vmatpush1.bf16.msra.mxu0 %v1884_v51  ;;  %v1932_v21 = vld [vmem:[%s2448_s3 + $0x1f0] ss:$8 sps:$4 sm:$0xff]  }
  0x44   : > { %586 = vmatprep.mubr.bf16.mxu1 %v1987_v2  ;;  %1273 = vmatprep.subr.bf16.mxu0 %v1892_v54 }
  0x45   : > { %1299 = vmatpush1.bf16.msra.mxu1 %v1887_v53 }
  0x46   : > { %1300 = vmatprep.subr.bf16.mxu1 %v1895_v56 }
  0x47   : > { %1274 = vmatpush1.bf16.msra.mxu0 %v1890_v55 }
  0x48   : > { %1275 = vmatprep.subr.bf16.mxu0 %v1898_v58 }
  0x49   : > { %1301 = vmatpush1.bf16.msra.mxu1 %v1893_v57 }
  0x4a   : > { %1302 = vmatprep.subr.bf16.mxu1 %v1901_v60 }
  0x4b   : > { %1640 = vmatmul.mubr.msk.bf16.gmra.mrb[28].mxu1 %vm438_vm0, %v1835_v23  ;;  %1276 = vmatpush1.bf16.msra.mxu0 %v1896_v59 }
  0x4c   : > { %1277 = vmatprep.subr.bf16.mxu0 %v1904_v63 }
  0x4d   : > { %1303 = vmatpush1.bf16.msra.mxu1 %v1899_v62 }
  0x4e   : > { %1304 = vmatprep.subr.bf16.mxu1 %v1907_v1 }
  0x4f   : > { %1278 = vmatpush1.bf16.msra.mxu0 %v1902_v0 }
  0x50   : > { %1279 = vmatprep.subr.bf16.mxu0 %v1910_v4 }
  0x51   : > { %1305 = vmatpush1.bf16.msra.mxu1 %v1905_v3 }
  0x52   : > { %1306 = vmatprep.subr.bf16.mxu1 %v1913_v6 }
  0x53   : > { %1280 = vmatpush1.bf16.msra.mxu0 %v1908_v5 }
  0x55   : > { %1307 = vmatpush1.bf16.msra.mxu1 %v1911_v7 }
  0x56   : > { %1308 = vmatprep.subr.bf16.mxu1 %v1916_v8 }
  0x59   : > { %1309 = vmatpush1.bf16.msra.mxu1 %v1914_v9 }
  0x5a   : > { %1310 = vmatprep.subr.bf16.mxu1 %v1919_v10 }
  0x5d   : > { %1311 = vmatpush1.bf16.msra.mxu1 %v1917_v11 }
  0x5e   : > { %1312 = vmatprep.subr.bf16.mxu1 %v1922_v12  ;;  %v666_v12 = vld [vmem:[#allocation2 + $0x20] sm:$0xff] }
  0x61   : > { %1313 = vmatpush1.bf16.msra.mxu1 %v1920_v13  ;;  %v767_v13 = vlaneseq }
  0x62   : > { %1314 = vmatprep.subr.bf16.mxu1 %v1925_v15 }
  0x65   : > { %1315 = vmatpush1.bf16.msra.mxu1 %v1923_v14 }
  0x66   : > { %1316 = vmatprep.subr.bf16.mxu1 %v1928_v16 }
  0x69   : > { %1317 = vmatpush1.bf16.msra.mxu1 %v1926_v17 }
  0x6a   : > { %1318 = vmatprep.subr.bf16.mxu1 %v1931_v18 }
  0x6d   : > { %1319 = vmatpush1.bf16.msra.mxu1 %v1929_v19 }
  0x6e   : > { %1320 = vmatprep.subr.bf16.mxu1 %v1934_v20  ;;  %v2328_v20 = vshrl.u32 %v767_v13, 7 }
  0x71   : > { %1321 = vmatpush1.bf16.msra.mxu1 %v1932_v21 }
  0x72   : > { %1331 = vmatprep.subr.bf16.mxu1 %v1937_v22 }
  0xe6   : > { %v485_v23 = vpop.f32.mrb[0].mxu1 }
  0xe7   : > { %v487_v24 = vpop.f32.mrb[1].mxu1 }
  0xe8   : > { %v489_v25 = vpop.f32.mrb[2].mxu1 }
  0xe9   : > { %v667_v26 = vadd.f32 %v489_v25, %v485_v23  ;;  %v491_v27 = vpop.f32.mrb[3].mxu1  ;;  %v1774_v37 = vpop.f32.mrb[0].mxu0 }
  0xea   : > { %v674_v28 = vadd.f32 %v491_v27, %v487_v24  ;;  %v631_v38 = vpop.f32.mrb[1].mxu0  ;;  %v699_v45 = vsel %vm312_vm1, %v1774_v37, 0.0 }
  0xeb   : > { %v696_v39 = vsel %vm312_vm1, %v631_v38, 0.0  ;;  %v1775_v40 = vpop.f32.mrb[2].mxu0 }
  0xec   : > { %v634_v42 = vpop.f32.mrb[3].mxu0  ;;  %v701_v52 = vsel %vm312_vm1, %v1775_v40, 0.0 }
  0xed   : > { %v697_v46 = vsel %vm312_vm1, %v634_v42, 0.0 }
  0xee   : > { %v495_v29 = vpop.f32.mrb[4].mxu1  ;;  %v698_v49 = vadd.f32 %v697_v46, %v696_v39 }
  0xef   : > { %v668_v30 = vadd.f32 %v667_v26, %v495_v29  ;;  %v497_v31 = vpop.f32.mrb[5].mxu1 }
  0xf0   : > { %v675_v32 = vadd.f32 %v674_v28, %v497_v31  ;;  %v499_v33 = vpop.f32.mrb[6].mxu1  ;;  %v700_v54 = vadd.f32 %v699_v45, %v698_v49 }
  0xf1   : > { %v669_v34 = vadd.f32 %v668_v30, %v499_v33  ;;  %v501_v35 = vpop.f32.mrb[7].mxu1  ;;  %v1778_v55 = vpop.f32.mrb[4].mxu0  ;;  %v769_v30 = vsub.s32 0, %v2328_v20  ;;  %v773_v33 = vsub.s32 1, %v2328_v20 }
  0xf2   : > { %v676_v36 = vadd.f32 %v675_v32, %v501_v35  ;;  %v647_v56 = vpop.f32.mrb[5].mxu0  ;;  %v702_v57 = vadd.f32 %v701_v52, %v700_v54  ;;  %v707_v1 = vsel %vm312_vm1, %v1778_v55, 0.0  ;;  %v2335_v32 = vld [vmem:[%s2447_s2] sm:$0x1f] }
  0xf3   : > { %v703_v58 = vsel %vm312_vm1, %v647_v56, 0.0  ;;  %v1779_v59 = vpop.f32.mrb[6].mxu0  ;;  %v770_v40 = vrot.slane %v2335_v32, %v769_v30 }
  0xf4   : > { %v704_v61 = vadd.f32 %v703_v58, %v702_v57  ;;  %v650_v62 = vpop.f32.mrb[7].mxu0  ;;  %v709_v9 = vsel %vm312_vm1, %v1779_v59, 0.0 }
  0xf5   : > { %v705_v3 = vsel %vm312_vm1, %v650_v62, 0.0 }
  0xf6   : > { %v505_v41 = vpop.f32.mrb[8].mxu1  ;;  %v706_v6 = vadd.f32 %v705_v3, %v704_v61 }
  0xf7   : > { %v670_v43 = vadd.f32 %v669_v34, %v505_v41  ;;  %v507_v44 = vpop.f32.mrb[9].mxu1 }
  0xf8   : > { %v677_v47 = vadd.f32 %v676_v36, %v507_v44  ;;  %v509_v48 = vpop.f32.mrb[10].mxu1  ;;  %v708_v11 = vadd.f32 %v707_v1, %v706_v6  ;;  %v774_v44 = vrot.slane %v2335_v32, %v773_v33 }
  0xf9   : > { %v671_v50 = vadd.f32 %v670_v43, %v509_v48  ;;  %v511_v51 = vpop.f32.mrb[11].mxu1 }
  0xfa   : > { %v678_v53 = vadd.f32 %v677_v47, %v511_v51  ;;  %v710_v14 = vadd.f32 %v709_v9, %v708_v11 }
  0xfc   : > { %v715_v17 = vadd.f32 %v710_v14, %v666_v12 }
  0xfe   : > { %v515_v60 = vpop.f32.mrb[12].mxu1  ;;  %720 = vst.msk [vmem:[#allocation2 + $0x20] sm:$0xff] %vm312_vm1, %v715_v17  ;;  %v777_v17 = vsub.s32 2, %v2328_v20 }
  0xff   : > { %v672_v63 = vadd.f32 %v671_v50, %v515_v60  ;;  %v517_v0 = vpop.f32.mrb[13].mxu1 }
 0x100   : > { %v679_v4 = vadd.f32 %v678_v53, %v517_v0  ;;  %v519_v5 = vpop.f32.mrb[14].mxu1 }
 0x101   : > { %v673_v7 = vadd.f32 %v672_v63, %v519_v5  ;;  %v521_v8 = vpop.f32.mrb[15].mxu1 }
 0x102   : > { %v680_v10 = vadd.f32 %v679_v4, %v521_v8 }
 0x103   : > { %v729_v15 = vrot.slane %v673_v7, 4 }
 0x104   : > { %v735_v18 = vrot.slane %v680_v10, 4 }
 0x105   : > { %v730_v21 = vadd.f32 %v729_v15, %v673_v7  ;;  %v728_v6 = vld [vmem:[#allocation2 + $0x20] sm:$0xff] }
 0x106   : > { %v558_v16 = vpop.f32.mrb[16].mxu1  ;;  %v736_v23 = vadd.f32 %v735_v18, %v680_v10  ;;  %v753_v8 = vsel %vm312_vm1, %v728_v6, 0.0 }
 0x107   : > { %v560_v19 = vpop.f32.mrb[17].mxu1  ;;  %v731_v26 = vrot.slane %v730_v21, 2  ;;  %v754_v12 = vrot.slane %v753_v8, 4 }
 0x108   : > { %v562_v22 = vpop.f32.mrb[18].mxu1  ;;  %v737_v28 = vrot.slane %v736_v23, 2 }
 0x109   : > { %v681_v24 = vadd.f32 %v562_v22, %v558_v16  ;;  %v564_v25 = vpop.f32.mrb[19].mxu1  ;;  %v732_v29 = vadd.f32 %v731_v26, %v730_v21  ;;  %v755_v18 = vadd.f32 %v754_v12, %v753_v8  ;;  %v781_v21 = vsub.s32 3, %v2328_v20 }
 0x10a   : > { %v688_v27 = vadd.f32 %v564_v25, %v560_v19  ;;  %v738_v31 = vadd.f32 %v737_v28, %v736_v23  ;;  %v778_v25 = vrot.slane %v2335_v32, %v777_v17 }
 0x10b   : > { %v733_v34 = vrot.slane %v732_v29, 1  ;;  %v756_v26 = vrot.slane %v755_v18, 2  ;;  %v782_v28 = vrot.slane %v2335_v32, %v781_v21 }
 0x10c   : > { %v739_v36 = vrot.slane %v738_v31, 1 }
 0x10d   : > { %v734_v39 = vadd.f32 %v733_v34, %v732_v29 }
 0x10e   : > { %v568_v35 = vpop.f32.mrb[20].mxu1  ;;  %v740_v43 = vadd.f32 %v739_v36, %v738_v31 }
 0x10f   : > { %v682_v37 = vadd.f32 %v681_v24, %v568_v35  ;;  %v570_v38 = vpop.f32.mrb[21].mxu1  ;;  %v760_v47 = vmul.f32 0.015625, %v734_v39  ;;  %v757_v35 = vadd.f32 %v756_v26, %v755_v18 }
 0x110   : > { %v689_v41 = vadd.f32 %v688_v27, %v570_v38  ;;  %v572_v42 = vpop.f32.mrb[22].mxu1  ;;  %v761_v49 = vmul.f32 0.015625, %v740_v43  ;;  %v1935_v38 = vld [vmem:[%s2448_s3 + $0x200] ss:$8 sps:$4 sm:$0xff]   ;;  %v1943_v43 = vld [vmem:[%s2448_s3 + $0x224] ss:$8 sps:$4 sm:$0xff]  }
 0x111   : > { %v683_v45 = vadd.f32 %v682_v37, %v572_v42  ;;  %v574_v46 = vpop.f32.mrb[23].mxu1  ;;  %v792_v50 = vadd.f32 %v770_v40, %v760_v47  ;;  %v1940_v40 = vld [vmem:[%s2448_s3 + $0x214] ss:$8 sps:$4 sm:$0xff]   ;;  %v1938_v42 = vld [vmem:[%s2448_s3 + $0x210] ss:$8 sps:$4 sm:$0xff]  }
 0x112   : > { %v690_v48 = vadd.f32 %v689_v41, %v574_v46  ;;  %v793_v51 = vadd.f32 %v774_v44, %v761_v49  ;;  %v758_v41 = vrot.slane %v757_v35, 1  ;;  %v1941_v46 = vld [vmem:[%s2448_s3 + $0x220] ss:$8 sps:$4 sm:$0xff]   ;;  %v1946_v47 = vld [vmem:[%s2448_s3 + $0x234] ss:$8 sps:$4 sm:$0xff]  }
 0x113   : > { %v797_v56 = vpack.c.bf16 %v792_v50, %v792_v50  ;;  %v1944_v49 = vld [vmem:[%s2448_s3 + $0x230] ss:$8 sps:$4 sm:$0xff]  }
 0x114   : > { %v798_v53 = vpack.c.bf16 %v793_v51, %v793_v51  ;;  %v759_v44 = vadd.f32 %v758_v41, %v757_v35 }
 0x116   : > { %v578_v52 = vpop.f32.mrb[24].mxu1  ;;  %1281 = vmatprep.mubr.bf16.mxu0 %v798_v53  ;;  %v1948_v53 = vld [vmem:[%s2450_s5] sm:$0xff]  }
 0x117   : > { %v684_v54 = vadd.f32 %v683_v45, %v578_v52  ;;  %v580_v55 = vpop.f32.mrb[25].mxu1  ;;  %1282 = vmatmul.mubr.bf16.vlgmr.msra.gmra.mrb[8].mxu0 %v797_v56  ;;  %v785_v45 = vsub.s32 4, %v2328_v20  ;;  %v1947_v52 = vld [vmem:[%s2450_s5 + $0x40] sm:$0xff]   ;;  %v1952_v56 = vld [vmem:[%s2450_s5 + $0x10] sm:$0xff]  }
 0x118   : > { %v691_v57 = vadd.f32 %v690_v48, %v580_v55  ;;  %v582_v58 = vpop.f32.mrb[26].mxu1  ;;  %v764_v48 = vmul.f32 0.015625, %v759_v44  ;;  %1744 = vmatprep.subr.bf16.mxu0 %v1947_v52  ;;  %v1951_v55 = vld [vmem:[%s2450_s5 + $0x50] sm:$0xff]   ;;  %v1408_v20 = vld [vmem:[%s2451_s6] sm:$0x1] }
 0x119   : > { %v685_v59 = vadd.f32 %v684_v54, %v582_v58  ;;  %v584_v60 = vpop.f32.mrb[27].mxu1  ;;  %1745 = vmatpush3.bf16.msra.mxu0 %v1948_v53  ;;  %v1950_v54 = vld [vmem:[%s2450_s5 + $0x8] sm:$0xff]   ;;  %v1954_v58 = vld [vmem:[%s2450_s5 + $0x18] sm:$0xff]  }
 0x11a   : > { %v692_v61 = vadd.f32 %v691_v57, %v584_v60  ;;  %v1953_v57 = vld [vmem:[%s2450_s5 + $0x58] sm:$0xff]   ;;  %v1956_v60 = vld [vmem:[%s2450_s5 + $0x20] sm:$0xff]  }
 0x11e   : > { %v588_v62 = vpop.f32.mrb[28].mxu1 }
 0x11f   : > { %v686_v63 = vadd.f32 %v685_v59, %v588_v62  ;;  %v590_v0 = vpop.f32.mrb[29].mxu1  ;;  %v1955_v59 = vld [vmem:[%s2450_s5 + $0x60] sm:$0xff]   ;;  %v1958_v62 = vld [vmem:[%s2450_s5 + $0x28] sm:$0xff]  }
 0x120   : > { %v693_v1 = vadd.f32 %v692_v61, %v590_v0  ;;  %v592_v3 = vpop.f32.mrb[30].mxu1  ;;  %v1957_v61 = vld [vmem:[%s2450_s5 + $0x68] sm:$0xff]   ;;  %v1960_v0 = vld [vmem:[%s2450_s5 + $0x30] sm:$0xff]  }
 0x121   : > { %v687_v4 = vadd.f32 %v686_v63, %v592_v3  ;;  %v594_v5 = vpop.f32.mrb[31].mxu1  ;;  %v1959_v63 = vld [vmem:[%s2450_s5 + $0x70] sm:$0xff]   ;;  %v1962_v3 = vld [vmem:[%s2450_s5 + $0x38] sm:$0xff]  }
 0x122   : > { %v694_v7 = vadd.f32 %v693_v1, %v594_v5  ;;  %v1961_v1 = vld [vmem:[%s2450_s5 + $0x78] sm:$0xff]  }
 0x123   : > { %v741_v9 = vrot.slane %v687_v4, 4 }
 0x124   : > { %v747_v10 = vrot.slane %v694_v7, 4 }
 0x125   : > { %v742_v11 = vadd.f32 %v741_v9, %v687_v4  ;;  %v874_v4 = vld [vmem:[%s2449_s4] sm:$0x3] }
 0x126   : > { %v748_v13 = vadd.f32 %v747_v10, %v694_v7  ;;  %v1239_v5 = vrot.slane %v874_v4, %v769_v30 }
 0x127   : > { %v743_v14 = vrot.slane %v742_v11, 2 }
 0x128   : > { %v749_v15 = vrot.slane %v748_v13, 2 }
 0x129   : > { %v744_v16 = vadd.f32 %v743_v14, %v742_v11  ;;  %v1243_v11 = vrot.slane %v874_v4, %v773_v33 }
 0x12a   : > { %v750_v19 = vadd.f32 %v749_v15, %v748_v13 }
 0x12b   : > { %v745_v22 = vrot.slane %v744_v16, 1 }
 0x12c   : > { %v751_v23 = vrot.slane %v750_v19, 1 }
 0x12d   : > { %v746_v24 = vadd.f32 %v745_v22, %v744_v16 }
 0x12e   : > { %v752_v27 = vadd.f32 %v751_v23, %v750_v19 }
 0x12f   : > { %v762_v29 = vmul.f32 0.015625, %v746_v24 }
 0x130   : > { %v763_v31 = vmul.f32 0.015625, %v752_v27 }
 0x131   : > { %v794_v34 = vadd.f32 %v778_v25, %v762_v29 }
 0x132   : > { %v795_v36 = vadd.f32 %v782_v28, %v763_v31 }
 0x133   : > { %v799_v39 = vpack.c.bf16 %v794_v34, %v794_v34 }
 0x134   : > { %v800_v37 = vpack.c.bf16 %v795_v36, %v795_v36 }
 0x136   : > { %1322 = vmatprep.mubr.bf16.mxu1 %v800_v37 }
 0x137   : > { %1323 = vmatmul.mubr.bf16.vlgmr.msra.gmra.mrb[32].mxu1 %v799_v39 }
 0x138   : > { %1332 = vmatpush1.bf16.msra.mxu1 %v1935_v38  ;;  %1363 = vmatprep.mubr.bf16.mxu1 %v1987_v2  ;;  %v786_v2 = vrot.slane %v2335_v32, %v785_v45  ;;  %v1949_v32 = vld [vmem:[%s2450_s5 + $0x48] sm:$0xff]  }
 0x139   : > { %1333 = vmatprep.subr.bf16.mxu1 %v1940_v40  ;;  %1746 = vmatprep.subr.bf16.mxu0 %v1949_v32 }
 0x13a   : > { %v796_v50 = vadd.f32 %v786_v2, %v764_v48  ;;  %1747 = vmatpush3.bf16.msra.mxu0 %v1950_v54 }
 0x13b   : > { %1748 = vmatprep.subr.bf16.mxu0 %v1951_v55 }
 0x13c   : > { %1334 = vmatpush1.bf16.msra.mxu1 %v1938_v42  ;;  %v801_v51 = vpack.c.bf16 %v796_v50, %v796_v50 }
 0x13d   : > { %1335 = vmatprep.subr.bf16.mxu1 %v1943_v43 }
 0x13e   : > { %1749 = vmatpush3.bf16.msra.mxu0 %v1952_v56 }
 0x13f   : > { %1750 = vmatprep.subr.bf16.mxu0 %v1953_v57 }
 0x140   : > { %1336 = vmatpush1.bf16.msra.mxu1 %v1941_v46 }
 0x141   : > { %1337 = vmatprep.subr.bf16.mxu1 %v1946_v47 }
 0x142   : > { %1751 = vmatpush3.bf16.msra.mxu0 %v1954_v58 }
 0x143   : > { %1752 = vmatprep.subr.bf16.mxu0 %v1955_v59 }
 0x144   : > { %1338 = vmatpush1.bf16.msra.mxu1 %v1944_v49 }
 0x146   : > { %1753 = vmatpush3.bf16.msra.mxu0 %v1956_v60 }
 0x147   : > { %1717 = vmatmul.mubr.msk.bf16.vlgmr.msra.gmra.mrb[32].mxu1 %vm312_vm1, %v801_v51  ;;  %1754 = vmatprep.subr.bf16.mxu0 %v1957_v61 }
 0x14a   : > { %1755 = vmatpush3.bf16.msra.mxu0 %v1958_v62 }
 0x14b   : > { %1756 = vmatprep.subr.bf16.mxu0 %v1959_v63 }
 0x14e   : > { %1757 = vmatpush3.bf16.msra.mxu0 %v1960_v0 }
 0x14f   : > { %1758 = vmatprep.subr.bf16.mxu0 %v1961_v1 }
 0x152   : > { %1759 = vmatpush3.bf16.msra.mxu0 %v1962_v3 }
 0x1ea   : > { %v1283_v6 = vpop.f32.mrb[8].mxu0 }
 0x1eb   : > { %v1284_v7 = vadd.f32 %v1283_v6, %v1239_v5  ;;  %v1285_v8 = vpop.f32.mrb[9].mxu0 }
 0x1ec   : > { %v1287_v9 = vpop.f32.mrb[10].mxu0  ;;  %v1286_v12 = vadd.f32 %v1285_v8, %v1243_v11 }
 0x1ed   : > { %v1288_v10 = vpop.f32.mrb[11].mxu0 }
 0x21a   : > { %v1365_v13 = vpop.f32.mrb[32].mxu1 }
 0x21b   : > { %v1781_v14 = vadd.f32 %v1365_v13, %v1284_v7  ;;  %v1367_v15 = vpop.f32.mrb[33].mxu1 }
 0x21c   : > { %v1783_v16 = vadd.f32 %v1367_v15, %v1286_v12  ;;  %v1369_v17 = vpop.f32.mrb[34].mxu1 }
 0x21d   : > { %v1372_v18 = vmax.f32 %v1781_v14, 0.0  ;;  %v1370_v19 = vpop.f32.mrb[35].mxu1 }
 0x21e   : > { %v1373_v21 = vmax.f32 %v1783_v16, 0.0 }
 0x21f   : > { %v1374_v30 = vpack.c.bf16 %v1372_v18, %v1372_v18 }
 0x220   : > { %v1375_v22 = vpack.c.bf16 %v1373_v21, %v1373_v21 }
 0x222   : > { %1537 = vmatprep.mubr.bf16.mxu0 %v1375_v22 }
 0x223   : > { %1538 = vmatmul.mubr.bf16.vlgmr.msra.gmra.mrb[12].mxu0 %v1374_v30 }
 0x2f6   : > { %v1760_v23 = vpop.f32.mrb[12].mxu0 }
 0x2f7   : > { %v1761_v33 = vpop.f32.mrb[13].mxu0 }
 0x2f8   : > { %v1762_v24 = vadd.f32 %v1761_v33, %v1760_v23  ;;  %v1763_v25 = vpop.f32.mrb[14].mxu0 }
 0x2f9   : > { %v1764_v26 = vpop.f32.mrb[15].mxu0 }
 0x2fa   : > { %v1540_v27 = vadd.f32 %v1762_v24, %v1408_v20 }
 0x2fc   : > { %1545 = vst [vmem:[%s302_s14] sm:$0x1] %v1540_v27 }
 0x2fd PF: > { %s17_s26 = sadd.s32 1, %s1985_s26   ;;  %s2453_s24 = smov %s1981_s25 }
 0x2fe   : > { %p14_p5 = scmp.ge.s32.totalorder %s17_s26, 4   ;;  %s2454_s25 = smov %s2456_s27 }
 0x300   :  { %16 = sbr.rel (!%p14_p5) target bundleno = 2 (0x2), region = 86 }

</bundles_post_ra>
